<compile_context>
chip_gen: v5e
topology: v5e:2x2
jax: 0.10.0
libtpu: 0.0.40
codegen_flags: <defaults>
</compile_context>

<pallas_src>
import jax
import jax.numpy as jnp
from jax.experimental import pallas as pl
from jax.experimental.pallas import tpu as pltpu


# ---------------------------------------------------------------------------
# Kernel 1: items is None  ->  (B, item_size) scores, streamed over item tiles
# ---------------------------------------------------------------------------
def _all_items_kernel(s2_ref, tab_ref, o_ref):
    # s2_ref : (2*Bp, E) bf16 -- [s_hi ; s_lo] split-bf16 of the f32 T-sum of cat_emb.
    #                            Grid-invariant, stays VMEM resident across tiles.
    # tab_ref: (E, ti)   bf16 -- streamed lane-dense item-table tile (double-buffered).
    # o_ref  : (Bp, ti)  f32  -- lane-dense score tile (ti % 128 == 0 -> unmasked vst).
    bp = o_ref.shape[0]
    # Plain NN contraction (2Bp, E) x (E, ti): no in-kernel transpose / XLU traffic.
    r = jnp.dot(s2_ref[...], tab_ref[...], preferred_element_type=jnp.float32)
    # Recombine hi + lo halves: keeps `s` at ~f32 accuracy while both MXU operands
    # stay bf16 (avoids relying on mixed f32 x bf16 matmul lowering).
    o_ref[...] = r[:bp, :] + r[bp:, :]


def _choose_item_tile(num_items, embed, bp, budget_bytes=24 * 1024 * 1024):
    """Pick the item-tile width ti (multiple of 128) from a VMEM byte budget.

    Double-buffered working set per item column:
        2 * (2*E)   bytes of bf16 table   +   2 * (4*Bp) bytes of f32 output.
    budget 24 MiB, E=32, Bp=8  ->  ti = 131072 (8 MiB table / 4 MiB out per buffer):
      v6e/v7x: fits the 32 MiB scoped default; v5e: fits once vmem_limit_bytes=32 MiB
      is set (physical VMEM 128 MiB).  On v7x (64 MiB physical) 24 MiB + headroom is
      safe and we keep grid >= 2 so both TensorCores get work.
    """
    if num_items <= 128:
        return num_items                      # tiny table: single full-width tile
    per_item = 2 * (2 * embed + 4 * bp)
    ti = max(128, (budget_bytes // per_item) // 128 * 128)
    if pl.cdiv(num_items, ti) < 2:
        # Keep >= 2 grid steps: enables v7x megacore split and input/output pipelining.
        ti = max(128, ((-(-num_items // 2)) + 127) // 128 * 128)
    return ti


def score_all_items(cat_emb, item_table_t):
    """cat_emb: (B, T, E) f32.  item_table_t: (E, I) bf16 (pre-transposed).  -> (B, I) f32."""
    B, T, E = cat_emb.shape
    Et, I = item_table_t.shape
    assert Et == E

    # Pad B to a multiple of 8 so the (Bp, ti) output block is sublane-dense.
    Bp = ((B + 7) // 8) * 8

    # Hoist the T-reduction out of the item-tile loop (tiny (B, E), grid-invariant).
    s = jnp.sum(cat_emb, axis=1)                                   # (B, E) f32
    if Bp != B:
        s = jnp.pad(s, ((0, Bp - B), (0, 0)))
    # Split-bf16 representation of f32 `s`:  s ~= s_hi + s_lo  (both bf16).
    s_hi = s.astype(jnp.bfloat16)
    s_lo = (s - s_hi.astype(jnp.float32)).astype(jnp.bfloat16)
    s2 = jnp.concatenate([s_hi, s_lo], axis=0)                     # (2*Bp, E) bf16

    ti = _choose_item_tile(I, E, Bp)
    grid = (pl.cdiv(I, ti),)
    # NOTE: with cdiv the last partial tile may read past the table; this is safe only
    # because the contraction is over E (no cross-item mixing) and OOB output columns
    # are masked at writeback.
    # TODO(synk): for deployed B >= 64 consider emitting the scores in bf16 (halves
    # output HBM writes) and re-deriving ti from 2*ti*(2E + 2*Bp) <= budget.

    out = pl.pallas_call(
        _all_items_kernel,
        out_shape=jax.ShapeDtypeStruct((Bp, I), jnp.float32),
        grid=grid,
        in_specs=[
            pl.BlockSpec((2 * Bp, E), lambda i: (0, 0)),   # grid-invariant s (hi;lo)
            pl.BlockSpec((E, ti), lambda i: (0, i)),       # streamed lane-dense table tile
        ],
        out_specs=pl.BlockSpec((Bp, ti), lambda i: (0, i)),
        compiler_params=pltpu.CompilerParams(
            dimension_semantics=("parallel",),             # split tiles across v7x's 2 TCs
            vmem_limit_bytes=32 * 1024 * 1024),
    )(s2, item_table_t)
    return out[:B] if Bp != B else out


# ---------------------------------------------------------------------------
# Kernel 2: items given  ->  (B,) scores.  Pallas only when B is large.
# ---------------------------------------------------------------------------
def _items_kernel(i_ref, c_ref, o_ref):
    # i_ref: (Bt, Ni, E) f32, c_ref: (Bt, T, E) f32, o_ref: (1, Bt) f32 (lane-major).
    i_sum = jnp.sum(i_ref[...], axis=1)                            # (Bt, E)
    c_sum = jnp.sum(c_ref[...], axis=1)                            # (Bt, E)
    prod = i_sum * c_sum                                           # VPU
    ones = jnp.ones((1, prod.shape[-1]), jnp.float32)
    # Contract over E -> naturally lane-major (1, Bt) result (unmasked stores).
    o_ref[...] = jax.lax.dot_general(
        ones, prod,
        dimension_numbers=(((1,), (1,)), ((), ())),
        preferred_element_type=jnp.float32)


def score_items(i_emb, cat_emb, *, b_tile=128):
    """i_emb: (B, Ni, E) f32, cat_emb: (B, T, E) f32  ->  (B,) f32."""
    B, Ni, E = i_emb.shape
    _, T, _ = cat_emb.shape
    if B < b_tile or B % b_tile != 0:
        # Tiny / ragged batch: the factored reduction is a few hundred FLOPs; a
        # pallas_call launch + single-step pipeline would dwarf the work (perf review).
        return jnp.sum(jnp.sum(i_emb, axis=1) * jnp.sum(cat_emb, axis=1), axis=-1)

    out = pl.pallas_call(
        _items_kernel,
        out_shape=jax.ShapeDtypeStruct((1, B), jnp.float32),
        grid=(B // b_tile,),
        in_specs=[
            pl.BlockSpec((b_tile, Ni, E), lambda b: (b, 0, 0)),
            pl.BlockSpec((b_tile, T, E), lambda b: (b, 0, 0)),
        ],
        out_specs=pl.BlockSpec((1, b_tile), lambda b: (0, b)),
        compiler_params=pltpu.CompilerParams(
            dimension_semantics=("parallel",)),
    )(i_emb, cat_emb)
    return out[0]


# ---------------------------------------------------------------------------
# Model parameters + forward (glue in plain JAX, hot path in Pallas)
# ---------------------------------------------------------------------------
def init_params(key, user_size, item_size, embed_size, cate_pad, attr_pad):
    ks = jax.random.split(key, 9)

    def nrm(k, shape, std):
        return (std * jax.random.normal(k, shape)).astype(jnp.float32)

    params = {
        'u_emb': nrm(ks[0], (user_size, embed_size), 0.01),
        'i_emb': nrm(ks[1], (item_size, embed_size), 0.01),   # canonical f32 (I, E)
        'cate_emb': nrm(ks[2], (cate_pad + 1, embed_size), 0.01),
        'attr_emb': nrm(ks[3], (attr_pad + 1, embed_size), 0.01),
        'cate_emb_context': nrm(ks[4], (cate_pad + 1, embed_size), 0.01),
        'attr_emb_context': nrm(ks[5], (attr_pad + 1, embed_size), 0.01),
        'cate_emb_target': nrm(ks[6], (cate_pad + 1, embed_size), 0.01),
        'attr_emb_target': nrm(ks[7], (attr_pad + 1, embed_size), 0.01),
        'bias': nrm(ks[8], (1,), 0.01),   # unused in forward (matches PyTorch)
    }
    # padding_idx = -1  ->  zero out the last row of the padded tables
    for name in ('cate_emb', 'attr_emb', 'cate_emb_context',
                 'attr_emb_context', 'cate_emb_target', 'attr_emb_target'):
        params[name] = params[name].at[-1, :].set(0.0)
    # Streaming copy for the all-items branch: (E, I) bf16.  Lane-dense tiles, half
    # the HBM bytes of f32; the gather path (items given) keeps the exact f32 table.
    params['i_emb_t'] = params['i_emb'].T.astype(jnp.bfloat16)
    return params


def forward(params, cates, attrs, cate_context, attr_context, users, items=None):
    # embedding gathers (glue)
    u_emb = jnp.take(params['u_emb'], users, axis=0)                    # (B, 1, E)
    c_emb = jnp.take(params['cate_emb'], cates, axis=0)                 # (B, Lc, E)
    a_emb = jnp.take(params['attr_emb'], attrs, axis=0)                 # (B, La, E)
    c_emb_c = jnp.take(params['cate_emb_context'], cate_context, axis=0)
    a_emb_c = jnp.take(params['attr_emb_context'], attr_context, axis=0)
    cat_emb = jnp.concatenate((u_emb, c_emb, a_emb, c_emb_c, a_emb_c), axis=1)  # (B, T, E)

    if items is None:
        return score_all_items(cat_emb, params['i_emb_t'])              # (B, item_size)
    else:
        i_emb = jnp.take(params['i_emb'], items, axis=0)                # (B, Ni, E) f32
        return score_items(i_emb, cat_emb)                              # (B,)


if __name__ == "__main__":
    # small synthetic config (item_size > 512 so the streamed kernel runs a 2-step grid)
    user_size, item_size, embed_size = 10, 1024, 32
    cate_pad, attr_pad = 7, 9
    B, Lc, La, Ni = 2, 3, 3, 4
    B_big = 256   # exercises the B-tiled Pallas path of the items branch

    key = jax.random.PRNGKey(0)
    pkey, k_small, k_big = jax.random.split(key, 3)

    params = init_params(pkey, user_size, item_size, embed_size, cate_pad, attr_pad)

    def make_inputs(k, b):
        kk = jax.random.split(k, 6)
        users = jax.random.randint(kk[0], (b, 1), 0, user_size, dtype=jnp.int32)
        cates = jax.random.randint(kk[1], (b, Lc), 0, cate_pad + 1, dtype=jnp.int32)
        attrs = jax.random.randint(kk[2], (b, La), 0, attr_pad + 1, dtype=jnp.int32)
        cate_ctx = jax.random.randint(kk[3], (b, Lc), 0, cate_pad + 1, dtype=jnp.int32)
        attr_ctx = jax.random.randint(kk[4], (b, La), 0, attr_pad + 1, dtype=jnp.int32)
        items = jax.random.randint(kk[5], (b, Ni), 0, item_size, dtype=jnp.int32)
        return users, cates, attrs, cate_ctx, attr_ctx, items

    def ref_cat_emb(cates, attrs, cate_ctx, attr_ctx, users):
        u = jnp.take(params['u_emb'], users, axis=0)
        c = jnp.take(params['cate_emb'], cates, axis=0)
        a = jnp.take(params['attr_emb'], attrs, axis=0)
        cc = jnp.take(params['cate_emb_context'], cate_ctx, axis=0)
        ac = jnp.take(params['attr_emb_context'], attr_ctx, axis=0)
        return jnp.concatenate((u, c, a, cc, ac), axis=1)

    users, cates, attrs, cate_ctx, attr_ctx, items = make_inputs(k_small, B)

    # ---- branch 1: items is None -> (B, item_size), Pallas-streamed item table ----
    out_all = forward(params, cates, attrs, cate_ctx, attr_ctx, users, items=None)
    out_all = jax.block_until_ready(out_all)
    assert out_all.shape == (B, item_size)
    cat_emb = ref_cat_emb(cates, attrs, cate_ctx, attr_ctx, users)
    ref1 = jnp.matmul(cat_emb, params['i_emb'].T).sum(axis=1)
    assert jnp.allclose(out_all, ref1, atol=1e-4, rtol=2e-2), (out_all, ref1)

    # ---- branch 2a: explicit items, tiny batch -> plain-JAX factored path ----
    out_items = forward(params, cates, attrs, cate_ctx, attr_ctx, users, items=items)
    out_items = jax.block_until_ready(out_items)
    assert out_items.shape == (B,)
    ie = jnp.take(params['i_emb'], items, axis=0)
    ref2 = jnp.einsum('bnd,btd->bnt', ie, cat_emb).sum(-1).sum(-1)
    assert jnp.allclose(out_items, ref2, atol=1e-5, rtol=1e-4), (out_items, ref2)

    # ---- branch 2b: explicit items, large batch -> Pallas kernel tiled over B ----
    users_b, cates_b, attrs_b, cate_ctx_b, attr_ctx_b, items_b = make_inputs(k_big, B_big)
    out_items_b = forward(params, cates_b, attrs_b, cate_ctx_b, attr_ctx_b,
                          users_b, items=items_b)
    out_items_b = jax.block_until_ready(out_items_b)
    assert out_items_b.shape == (B_big,)
    cat_emb_b = ref_cat_emb(cates_b, attrs_b, cate_ctx_b, attr_ctx_b, users_b)
    ie_b = jnp.take(params['i_emb'], items_b, axis=0)
    ref3 = jnp.einsum('bnd,btd->bnt', ie_b, cat_emb_b).sum(-1).sum(-1)
    assert jnp.allclose(out_items_b, ref3, atol=1e-5, rtol=1e-4), (out_items_b, ref3)

    print("KERNEL_OK")
</pallas_src>

<mosaic_0001>
module attributes {stable_mosaic.version = 11 : i64} {
  func.func @_all_items_kernel(%arg0: i32, %arg1: memref<16x32xbf16, #tpu.memory_space<vmem>>, %arg2: memref<32x512xbf16, #tpu.memory_space<vmem>>, %arg3: memref<8x512xf32, #tpu.memory_space<vmem>>) attributes {dimension_semantics = [#tpu.dimension_semantics<parallel>], iteration_bounds = array<i64: 2>, scalar_prefetch = 0 : i64, scratch_operands = 0 : i64, tpu.core_type = #tpu.core_type<tc>, window_params = [{pipeline_mode = #tpu.pipeline_mode<synchronous>, transform_indices = @transform_0, window_bounds = array<i64: 16, 32>}, {transform_indices = @transform_1, window_bounds = array<i64: 32, 512>}, {transform_indices = @transform_2, window_bounds = array<i64: 8, 512>}]} {
    %c0 = arith.constant 0 : index
    %c0_0 = arith.constant 0 : index
    %0 = vector.load %arg1[%c0, %c0_0] : memref<16x32xbf16, #tpu.memory_space<vmem>>, vector<16x32xbf16>
    %c0_1 = arith.constant 0 : index
    %c0_2 = arith.constant 0 : index
    %1 = vector.load %arg2[%c0_1, %c0_2] : memref<32x512xbf16, #tpu.memory_space<vmem>>, vector<32x512xbf16>
    %cst = arith.constant dense<0.000000e+00> : vector<16x512xf32>
    %2 = tpu.matmul %0, %1, %cst {dimension_numbers = #tpu.dot_dimension_numbers<[1], [0], [0], [1], [0, 0, 1, 1], [], []>} : vector<16x32xbf16>, vector<32x512xbf16>, vector<16x512xf32> -> vector<16x512xf32>
    %3 = vector.extract_strided_slice %2 {offsets = [0, 0], sizes = [8, 512], strides = [1, 1]} : vector<16x512xf32> to vector<8x512xf32>
    %4 = vector.extract_strided_slice %2 {offsets = [8, 0], sizes = [8, 512], strides = [1, 1]} : vector<16x512xf32> to vector<8x512xf32>
    %5 = arith.addf %3, %4 : vector<8x512xf32>
    %c0_3 = arith.constant 0 : index
    %c0_4 = arith.constant 0 : index
    %6 = vector.load %arg3[%c0_3, %c0_4] : memref<8x512xf32, #tpu.memory_space<vmem>>, vector<8x512xf32>
    tpu.vector_store %arg3[%c0_3, %c0_4], %5 {strides = array<i32>} : memref<8x512xf32, #tpu.memory_space<vmem>>, vector<8x512xf32>,
    return
  }
  func.func @transform_0(%arg0: i32) -> (i32, i32) {
    %c0_i32 = arith.constant 0 : i32
    %c0_i32_0 = arith.constant 0 : i32
    %c0_i32_1 = arith.constant 0 : i32
    return %c0_i32, %c0_i32_0 : i32, i32
  }
  func.func @transform_1(%arg0: i32) -> (i32, i32) {
    %c0_i32 = arith.constant 0 : i32
    %c0_i32_0 = arith.constant 0 : i32
    return %c0_i32, %arg0 : i32, i32
  }
  func.func @transform_2(%arg0: i32) -> (i32, i32) {
    %c0_i32 = arith.constant 0 : i32
    %c0_i32_0 = arith.constant 0 : i32
    return %c0_i32, %arg0 : i32, i32
  }
}

</mosaic_0001>

<bundles_post_ra>
// kernel: tpu_custom_call.1
= control target key start
LH: loop header
LB: loop body
LE: loop exit
PB: predicated region body
PF: predicated region fallthrough
CT: control target
= control target key end

     0   :  { %7 = vsyncpa [#allocation3], 0  ;;  %s829_s0 = inlined_call_operand.hbm [shape: bf16[16,32], index: 0, kind: input, shape index: {}]   ;;  %s830_s1 = inlined_call_operand.hbm [shape: bf16[32,1024], index: 1, kind: input, shape index: {}]   ;;  %s831_s2 = inlined_call_operand.hbm [shape: f32[8,1024], index: 2, kind: output, shape index: {}]  }
   0x1   :  { %8 = vsyncpa [#allocation6], 0 }
   0x2   :  { %10 = vsyncpa [#allocation6 + $0x1], 0 }
   0x3   :  { %11 = vsyncpa [#allocation4], 0 }
   0x4   :  { %13 = vsyncpa [#allocation4 + $0x1], 0  ;;  %s688_s9 = smov 0   ;;  %s690_s10 = smov 0  }
   0x5   :  { %s692_s11 = smov 0   ;;  %s694_s12 = smov 0  }
   0x6 LB: > { %s709_s13 = sadd.s32 4294967295, %s665_s12   ;;  %s406_s14 = sadd.s32 4294967294, %s665_s12   ;;  %s665_s12 = sphi %s694_s12, %s841_s12   ;;  %s661_s11 = sphi %s692_s11, %s840_s11   ;;  %s657_s10 = sphi %s690_s10, %s839_s10   ;;  %s653_s9 = sphi %s688_s9, %s838_s9  }
   0x7   : > { %p60_p0 = scmp.ne.s32.totalorder %s657_s10, %s653_s9  ;;  %p61_p1 = scmp.eq.s32.totalorder %s709_s13, 0 }
   0x8   : > { %p84_p2 = scmp.eq.s32.totalorder %s709_s13, 1  ;;  %p90_p3 = scmp.eq.s32.totalorder %s406_s14, 1 }
   0x9   : > { %p718_p4 = por %p61_p1, %p60_p0  ;;  %p407_p5 = scmp.ge.s32.totalorder %s665_s12, 1 }
   0xa   : > { %p723_p6 = por %p90_p3, %p60_p0  ;;  %p97_p7 = scmp.lt.s32.totalorder %s665_s12, 3 }
   0xb   : > { %s108_s19 = sshll.u32 %s829_s0, 4  ;;  %s667_s21 = smov [#allocation2]   ;;  %s109_s19 = int_to_ptr.hbm [resolvable:$true] %s108_s19 }
   0xc   : > { %p731_p8 = pnand %p407_p5, %p97_p7  ;;  %s110_s22 = sshll.u32 %s667_s21, 4  ;;  %s111_s22 = int_to_ptr.vmem [resolvable:$true] %s110_s22 }
   0xd   : > { %s741_s23 = sadd.s32 1, %s665_s12   ;;  %s668_s24 = smov 64  }
   0xe   : > { %p481_p9 = pneg %p731_p8  ;;  %s669_s25 = smov 4  }
   0xf   : > { %s44_s26 = ssub.s32 %s665_s12, %s741_s23  ;;  %s47_s27 = sadd.s32 1, %s661_s11 }
  0x10   : > { %p482_p10 = pnand %p481_p9, %p61_p1  ;;  %p45_p12 = scmp.eq.s32.totalorder %s44_s26, 0 }
  0x11   : > { %p54_p13 = scmp.ne.s32.totalorder %s661_s11, %s657_s10  ;;  %p55_p0 = scmp.eq.s32.totalorder %s665_s12, 0 }
  0x12   : > { %484 = dma.hbm_to_vmem [thread:$0]  (!%p482_p10), %s109_s19, 128, %s111_s22, [#allocation3], %s668_s24, %s668_s24, %s669_s25  }
  0x13   : > { %p494_p3 = scmp.lt.s32.totalorder %s665_s12, 2  ;;  %p56_p5 = por %p55_p0, %p54_p13 }
  0x14   : > { %s751_s28 = scalar_select %p45_p12, %s661_s11, %s47_s27  }
  0x15   : > { %p755_p7 = por %p84_p2, %p54_p13  ;;  %s124_s30 = sand.u32 1, %s661_s11  }
  0x16   : > { %s462_s3 = sshll.u32 %s665_s12, 4  ;;  %s410_s4 = sshll.u32 %s124_s30, 6 }
  0x17   : > { %s133_s7 = scalar_lea.hbm %s830_s1, %s462_s3  ;;  %s128_s14 = scalar_lea.vmem [#allocation5], %s410_s4 }
  0x18   : > { %s134_s8 = sshll.u32 %s133_s7, 4  ;;  %s136_s17 = sshll.u32 %s128_s14, 4  ;;  %s135_s8 = int_to_ptr.hbm [resolvable:$true] %s134_s8  ;;  %s137_s17 = int_to_ptr.vmem [resolvable:$true] %s136_s17 }
  0x19   : > { %p766_p9 = pnand %p494_p3, %p56_p5  ;;  %s125_s19 = scalar_lea.sflag [#allocation6], %s124_s30 }
  0x1a   : > { %s565_s21 = sshra.s32 %s135_s8, 4  ;;  %s572_s26 = scalar_lea.hbm %s830_s1, 128  ;;  %s566_s21 = int_to_ptr.hbm [resolvable:$true] %s565_s21 }
  0x1b   : > { %s567_s22 = scalar_lea.hbm %s566_s21, 64  ;;  %p569_p10 = pneg %p766_p9 }
  0x1c   : > { %p568_p2 = scmp.ne.s32.totalorder %s566_s21, %s567_s22  ;;  %p573_p0 = scmp.lt.s32.totalorder %s566_s21, %s830_s1 }
  0x1d   : > { %p574_p3 = scmp.lt.s32.totalorder %s572_s26, %s567_s22 }
  0x1e   : > { %p570_p12 = pnand %p569_p10, %p568_p2 }
  0x1f   : > { %p575_p5 = por %p574_p3, %p573_p0 }
  0x20   : > { %p571_p13 = pneg %p570_p12 }
  0x22   : > { %p576_p11 = pnand %p575_p5, %p571_p13 }
  0x24   : > { %579 = shalt.err (!%p576_p11)
}
  0x25   : > { %s670_s30 = smov 512   ;;  %s671_s4 = smov 256  }
  0x26   : > { %s672_s5 = smov 16   ;;  %148 = sbr.rel (%p731_p8) target bundleno = 206 (0xce), region = 28 }
  0x27   : > { %488 = dma.hbm_to_vmem [thread:$0]  (!%p766_p9), %s135_s8, 1024, %s137_s17, %s125_s19, %s670_s30, %s671_s4, %s672_s5  }
  0x2b   : > { %640 = dma.done.wait (%p61_p1), [#allocation3], 128  }
  0x2c   : > { %642 = vsyncadd (%p61_p1), [#allocation3], 4294967168  ;;  %s787_s6 = sand.u32 1, %s657_s10  }
  0x2d   : > { %s415_s7 = sshll.u32 %s787_s6, 6  ;;  %s156_s14 = scalar_lea.sflag [#allocation6], %s787_s6 }
  0x2e   : > { %s159_s21 = scalar_lea.vmem [#allocation5], %s415_s7 }
  0x2f   : > { %644 = dma.done.wait (%p718_p4), %s156_s14, 1024  }
  0x30   : > { %646 = vsyncadd (%p718_p4), %s156_s14, 4294966272  ;;  %v439_v0 = vld [vmem:[%s159_s21 + $0x20] sm:$0xf]  ;;  %v470_v1 = vld [vmem:[%s159_s21 + $0x2c] sm:$0xf0]  ;;  %vm239_vm0 = vcmask 261120  }
  0x31   : > { %v468_v2 = vld [vmem:[%s159_s21 + $0x24] sm:$0xf]  ;;  %v440_v3 = vor.u32 %v470_v1, %v439_v0  ;;  %v441_v4 = vld [vmem:[%s159_s21 + $0x30] sm:$0xf0]  ;;  %v447_v5 = vld [vmem:[%s159_s21 + $0x28] sm:$0xf] }
  0x32   : > { %v471_v6 = vld [vmem:[%s159_s21 + $0x34] sm:$0xf0]  ;;  %v444_v7 = vor.u32 %v468_v2, %v441_v4  ;;  %v469_v9 = vld [vmem:[%s159_s21 + $0x2c] sm:$0xf]  ;;  %v449_v10 = vld [vmem:[%s159_s21 + $0x38] sm:$0xf0] }
  0x33   : > { %v448_v8 = vor.u32 %v471_v6, %v447_v5  ;;  %v423_v11 = vld [vmem:[%s159_s21] sm:$0xf]  ;;  %249 = vmatpush.bf16.msra.mxu0 %v440_v3  ;;  %v452_v12 = vor.u32 %v469_v9, %v449_v10  ;;  %v466_v13 = vld [vmem:[%s159_s21 + $0xc] sm:$0xf0]  ;;  %v464_v14 = vld [vmem:[%s159_s21 + $0x4] sm:$0xf] }
  0x34   : > { %v425_v15 = vld [vmem:[%s159_s21 + $0x10] sm:$0xf0]  ;;  %263 = vmatpush.bf16.msra.mxu1 %v444_v7  ;;  %v424_v16 = vor.u32 %v466_v13, %v423_v11  ;;  %v431_v18 = vld [vmem:[%s159_s21 + $0x8] sm:$0xf]  ;;  %v467_v19 = vld [vmem:[%s159_s21 + $0x14] sm:$0xf0] }
  0x35   : > { %277 = vmatpush.bf16.msra.mxu2 %v448_v8  ;;  %v428_v17 = vor.u32 %v464_v14, %v425_v15  ;;  %v465_v20 = vld [vmem:[%s159_s21 + $0xc] sm:$0xf]  ;;  %291 = vmatpush.bf16.msra.mxu3 %v452_v12  ;;  %v432_v21 = vor.u32 %v467_v19, %v431_v18  ;;  %v433_v22 = vld [vmem:[%s159_s21 + $0x18] sm:$0xf0]  ;;  %s416_s15 = sshll.u32 %s787_s6, 5  ;;  %s472_s20 = sshll.u32 %s709_s13, 5 }
  0x36   : > { %v436_v23 = vor.u32 %v465_v20, %v433_v22  ;;  %v463_v24 = vld [vmem:[#allocation2] sm:$0xff]  ;;  %s180_s8 = scalar_lea.vmem [#allocation7], %s416_s15  ;;  %s319_s19 = scalar_lea.hbm %s831_s2, %s472_s20 }
  0x37   : > { %250 = vmatpush.bf16.msra.mxu0 %v424_v16  ;;  %s321_s22 = sshll.u32 %s180_s8, 4  ;;  %s323_s24 = sshll.u32 %s319_s19, 4  ;;  %s322_s22 = int_to_ptr.vmem [resolvable:$true] %s321_s22  ;;  %s324_s24 = int_to_ptr.hbm [resolvable:$true] %s323_s24 }
  0x38   : > { %264 = vmatpush.bf16.msra.mxu1 %v428_v17  ;;  %s308_s13 = scalar_lea.sflag [#allocation4], %s787_s6  ;;  %s609_s25 = sshra.s32 %s324_s24, 4  ;;  %s610_s25 = int_to_ptr.hbm [resolvable:$true] %s609_s25 }
  0x39   : > { %278 = vmatpush.bf16.msra.mxu2 %v432_v21  ;;  %292 = vmatpush.bf16.msra.mxu3 %v436_v23  ;;  %s611_s26 = scalar_lea.hbm %s610_s25, 32  ;;  %s615_s30 = scalar_lea.hbm %s831_s2, 64 }
  0x3a   : > { %453 = vmatmul.msk.bf16.vlgmr.msra.gmra.mxu0 %vm239_vm0, %v463_v24  ;;  %p612_p1 = scmp.ne.s32.totalorder %s610_s25, %s611_s26  ;;  %p616_p11 = scmp.lt.s32.totalorder %s610_s25, %s831_s2 }
  0x3b   : > { %454 = vmatmul.msk.bf16.vlgmr.msra.gmra.mxu1 %vm239_vm0, %v463_v24  ;;  %p617_p9 = scmp.lt.s32.totalorder %s615_s30, %s611_s26 }
  0x3c   : > { %455 = vmatmul.msk.bf16.vlgmr.msra.gmra.mxu2 %vm239_vm0, %v463_v24  ;;  %456 = vmatmul.msk.bf16.vlgmr.msra.gmra.mxu3 %vm239_vm0, %v463_v24  ;;  %p613_p4 = pnand %p612_p1, %p755_p7 }
  0x3d   : > { %p618_p2 = por %p617_p9, %p616_p11 }
  0x3e   : > { %p614_p8 = pneg %p613_p4 }
  0x40   : > { %p619_p10 = pnand %p618_p2, %p614_p8 }
  0xb7   : > { %v252_v25 = vpop.f32.mrf.mxu0 }
  0xb8   : > { %v266_v26 = vpop.f32.mrf.mxu1 }
  0xbf   : > { %v280_v27 = vpop.f32.mrf.mxu2  ;;  %v294_v28 = vpop.f32.mrf.mxu3 }
  0xc0   : > { %v254_v29 = vpop.f32.mrf.mxu0  ;;  %v268_v31 = vpop.f32.mrf.mxu1 }
  0xc1   : > { %v299_v30 = vadd.f32 %v254_v29, %v252_v25  ;;  %v300_v32 = vadd.f32 %v268_v31, %v266_v26 }
  0xc3   : > { %303 = vst [vmem:[%s180_s8] sm:$0xff] %v299_v30 }
  0xc4   : > { %304 = vst [vmem:[%s180_s8 + $0x8] sm:$0xff] %v300_v32 }
  0xc7   : > { %v282_v33 = vpop.f32.mrf.mxu2  ;;  %v296_v35 = vpop.f32.mrf.mxu3 }
  0xc8   : > { %v301_v34 = vadd.f32 %v282_v33, %v280_v27  ;;  %v302_v36 = vadd.f32 %v296_v35, %v294_v28 }
  0xca   : > { %305 = vst [vmem:[%s180_s8 + $0x10] sm:$0xff] %v301_v34 }
  0xcb   : > { %306 = vst [vmem:[%s180_s8 + $0x18] sm:$0xff] %v302_v36 }
  0xcc   : > { %622 = shalt.err (!%p619_p10)
}
  0xcd   : > { %479 = dma.vmem_to_hbm [thread:$0]  (%p755_p7), %s322_s22, 512, %s324_s24, %s308_s13  }
  0xce PF: > { %s335_s6 = sand.u32 1, %s653_s9   ;;  %p837_p12 = scmp.ge.s32.totalorder %s665_s12, 2 }
  0xcf   : > { %s336_s7 = scalar_lea.sflag [#allocation4], %s335_s6 }
  0xd0   : > { %p490_p13 = pnand %p837_p12, %p723_p6 }
  0xd2   : > { %p491_p0 = pneg %p490_p13 }
  0xd4   : > { %648 = dma.done.wait (%p491_p0), %s336_s7, 512  }
  0xd5   : > { %650 = vsyncadd (%p491_p0), %s336_s7, 4294966784  ;;  %p16_p3 = scmp.ge.s32.totalorder %s741_s23, 4   ;;  %s838_s9 = smov %s657_s10 }
  0xd6   : > { %s839_s10 = smov %s661_s11  ;;  %s840_s11 = smov %s751_s28 }
  0xd7   : > { %s841_s12 = smov %s741_s23  ;;  %18 = sbr.rel (!%p16_p3) target bundleno = 6 (0x6), region = 78 }
  0xdc   :  { %342 = vsyncpa [#allocation3], 1 }
  0xdd   :  { %344 = vsyncpa [#allocation3 + $0x1], 1 }
  0xde   :  { %345 = vsyncpa [#allocation6], 1 }
  0xdf   :  { %347 = vsyncpa [#allocation6 + $0x1], 1 }
  0xe0   :  { %348 = vsyncpa [#allocation4], 1 }
  0xe1   :  { %350 = vsyncpa [#allocation4 + $0x1], 1 }

</bundles_post_ra>
